<compile_context>
chip_gen: v7x
topology: tpu7x:2x2x1
jax: 0.10.0
libtpu: 0.0.40
codegen_flags: <defaults>
</compile_context>

<pallas_src>
import jax
import jax.numpy as jnp
from jax.experimental import pallas as pl
from jax.experimental.pallas import tpu as pltpu

INPUT_SIZE = 21
HIDDEN = 23
NUM_CLASSES = 2

H_PAD = 128                  # hidden 23 -> 128 (lane-dense resident weights / h)
TB_MAX = 8192                # max batch-tile rows
VMEM_LIMIT = 48 * 1024 * 1024


def _round_up(n, m):
    return (n + m - 1) // m * m


def dnn_kernel(x_ref, w1_ref, b1_ref, w3_ref, b3_ref, out_ref):
    # fc1 + ReLU (f32 operands, f32 MXU accumulation).
    x = x_ref[...]                                                    # (TB, 21) f32
    h = jnp.dot(x, w1_ref[...], preferred_element_type=jnp.float32) + b1_ref[...]
    h = jnp.maximum(h, 0.0)
    # fc3 (N=2): MXU cost negligible; no intermediate casts.
    out_ref[...] = (
        jnp.dot(h, w3_ref[...], preferred_element_type=jnp.float32) + b3_ref[...]
    )


def dnn_forward(x, w1, b1, w3, b3, *, tb_max=TB_MAX):
    """x: (B, INPUT_SIZE) f32. Params are pre-transposed/hidden-padded (init_params)."""
    B, F = x.shape
    assert F == INPUT_SIZE

    # Balanced batch tiles: minimal padding waste (<8 rows per tile), and >=2
    # tiles when the batch is big enough so both v7x TensorCores get work.
    n_tiles = pl.cdiv(B, tb_max)
    if B >= 16:
        n_tiles = max(n_tiles, 2)
    TB = _round_up(pl.cdiv(B, n_tiles), 8)
    grid = (pl.cdiv(B, TB),)

    flops = 2 * B * (INPUT_SIZE * H_PAD + H_PAD * NUM_CLASSES)
    bytes_accessed = (
        B * INPUT_SIZE * 4                               # x (f32, unpadded: dominant stream)
        + B * NUM_CLASSES * 4                            # out (f32)
        + INPUT_SIZE * H_PAD * 4 + H_PAD * 4             # fc1 weight/bias (resident)
        + H_PAD * NUM_CLASSES * 4 + NUM_CLASSES * 4      # fc3 weight/bias (resident)
    )

    return pl.pallas_call(
        dnn_kernel,
        out_shape=jax.ShapeDtypeStruct((B, NUM_CLASSES), jnp.float32),
        grid=grid,
        in_specs=[
            pl.BlockSpec((TB, INPUT_SIZE), lambda i: (i, 0)),         # x: streamed per tile
            pl.BlockSpec((INPUT_SIZE, H_PAD), lambda i: (0, 0)),      # w1: resident
            pl.BlockSpec((1, H_PAD), lambda i: (0, 0)),               # b1: resident
            pl.BlockSpec((H_PAD, NUM_CLASSES), lambda i: (0, 0)),     # w3: resident
            pl.BlockSpec((1, NUM_CLASSES), lambda i: (0, 0)),         # b3: resident
        ],
        out_specs=pl.BlockSpec((TB, NUM_CLASSES), lambda i: (i, 0)),
        compiler_params=pltpu.CompilerParams(
            dimension_semantics=("parallel",),   # shard batch tiles across TCs on v7x
            vmem_limit_bytes=VMEM_LIMIT,
        ),
        cost_estimate=pl.CostEstimate(
            flops=flops, transcendentals=0, bytes_accessed=bytes_accessed),
    )(x, w1, b1, w3, b3)


def init_params(key):
    # nn.Linear-style U(-1/sqrt(fan_in), 1/sqrt(fan_in)) init on the true
    # (unpadded) shapes, stored transposed (in, out); hidden dim zero-padded
    # 23 -> 128 once at init. Everything stays f32.
    k1, k2, k3, k4 = jax.random.split(key, 4)
    lim1 = 1.0 / jnp.sqrt(INPUT_SIZE)
    lim3 = 1.0 / jnp.sqrt(HIDDEN)
    w1 = jax.random.uniform(k1, (INPUT_SIZE, HIDDEN), jnp.float32, -lim1, lim1)
    b1 = jax.random.uniform(k2, (1, HIDDEN), jnp.float32, -lim1, lim1)
    w3 = jax.random.uniform(k3, (HIDDEN, NUM_CLASSES), jnp.float32, -lim3, lim3)
    b3 = jax.random.uniform(k4, (1, NUM_CLASSES), jnp.float32, -lim3, lim3)

    w1p = jnp.zeros((INPUT_SIZE, H_PAD), jnp.float32).at[:, :HIDDEN].set(w1)
    b1p = jnp.zeros((1, H_PAD), jnp.float32).at[:, :HIDDEN].set(b1)
    w3p = jnp.zeros((H_PAD, NUM_CLASSES), jnp.float32).at[:HIDDEN, :].set(w3)
    b3p = b3
    return w1p, b1p, w3p, b3p


def reference(x, w1p, b1p, w3p, b3p):
    # Plain-JAX f32 forward on the same (padded) params; padded hidden units
    # are exact zeros so this equals the original 21->23->2 model.
    h = jnp.maximum(jnp.dot(x, w1p) + b1p, 0.0)
    return jnp.dot(h, w3p) + b3p


if __name__ == "__main__":
    key = jax.random.PRNGKey(0)
    kx, kp = jax.random.split(key)
    w1, b1, w3, b3 = init_params(kp)

    # Small, evenly-divisible batch.
    B = 8
    x = jax.random.normal(kx, (B, INPUT_SIZE), jnp.float32)
    y = jax.block_until_ready(dnn_forward(x, w1, b1, w3, b3))
    y_ref = reference(x, w1, b1, w3, b3)
    assert y.shape == (B, NUM_CLASSES)
    assert jnp.allclose(y, y_ref, atol=2e-2, rtol=2e-2)

    # Ragged batch: exercises the >=2-tile path and the masked last tile.
    B2 = 20
    x2 = jax.random.normal(kx, (B2, INPUT_SIZE), jnp.float32)
    y2 = jax.block_until_ready(dnn_forward(x2, w1, b1, w3, b3))
    y2_ref = reference(x2, w1, b1, w3, b3)
    assert y2.shape == (B2, NUM_CLASSES)
    assert jnp.allclose(y2, y2_ref, atol=2e-2, rtol=2e-2)

    print("KERNEL_OK")
</pallas_src>

<mosaic_0001>
module attributes {stable_mosaic.version = 11 : i64} {
  func.func @dnn_kernel(%arg0: i32, %arg1: memref<8x21xf32, #tpu.memory_space<vmem>>, %arg2: memref<21x128xf32, #tpu.memory_space<vmem>>, %arg3: memref<1x128xf32, #tpu.memory_space<vmem>>, %arg4: memref<128x2xf32, #tpu.memory_space<vmem>>, %arg5: memref<1x2xf32, #tpu.memory_space<vmem>>, %arg6: memref<8x2xf32, #tpu.memory_space<vmem>>) attributes {dimension_semantics = [#tpu.dimension_semantics<parallel>], iteration_bounds = array<i64: 1>, scalar_prefetch = 0 : i64, scratch_operands = 0 : i64, tpu.core_type = #tpu.core_type<tc>, window_params = [{transform_indices = @transform_0, window_bounds = array<i64: 8, 21>}, {pipeline_mode = #tpu.pipeline_mode<synchronous>, transform_indices = @transform_1, window_bounds = array<i64: 21, 128>}, {pipeline_mode = #tpu.pipeline_mode<synchronous>, transform_indices = @transform_2, window_bounds = array<i64: 1, 128>}, {pipeline_mode = #tpu.pipeline_mode<synchronous>, transform_indices = @transform_3, window_bounds = array<i64: 128, 2>}, {pipeline_mode = #tpu.pipeline_mode<synchronous>, transform_indices = @transform_4, window_bounds = array<i64: 1, 2>}, {transform_indices = @transform_5, window_bounds = array<i64: 8, 2>}]} {
    %c0 = arith.constant 0 : index
    %c0_0 = arith.constant 0 : index
    %0 = vector.load %arg1[%c0, %c0_0] : memref<8x21xf32, #tpu.memory_space<vmem>>, vector<8x21xf32>
    %c0_1 = arith.constant 0 : index
    %c0_2 = arith.constant 0 : index
    %1 = vector.load %arg2[%c0_1, %c0_2] : memref<21x128xf32, #tpu.memory_space<vmem>>, vector<21x128xf32>
    %cst = arith.constant dense<0.000000e+00> : vector<8x128xf32>
    %2 = tpu.matmul %0, %1, %cst {dimension_numbers = #tpu.dot_dimension_numbers<[1], [0], [0], [1], [0, 0, 1, 1], [], []>} : vector<8x21xf32>, vector<21x128xf32>, vector<8x128xf32> -> vector<8x128xf32>
    %c0_3 = arith.constant 0 : index
    %c0_4 = arith.constant 0 : index
    %3 = vector.load %arg3[%c0_3, %c0_4] : memref<1x128xf32, #tpu.memory_space<vmem>>, vector<1x128xf32>
    %4 = vector.broadcast %3 : vector<1x128xf32> to vector<8x128xf32>
    %5 = arith.addf %2, %4 : vector<8x128xf32>
    %cst_5 = arith.constant 0.000000e+00 : f32
    %6 = vector.broadcast %cst_5 : f32 to vector<8x128xf32>
    %7 = arith.maximumf %5, %6 : vector<8x128xf32>
    %c0_6 = arith.constant 0 : index
    %c0_7 = arith.constant 0 : index
    %8 = vector.load %arg4[%c0_6, %c0_7] : memref<128x2xf32, #tpu.memory_space<vmem>>, vector<128x2xf32>
    %cst_8 = arith.constant dense<0.000000e+00> : vector<8x2xf32>
    %9 = tpu.matmul %7, %8, %cst_8 {dimension_numbers = #tpu.dot_dimension_numbers<[1], [0], [0], [1], [0, 0, 1, 1], [], []>} : vector<8x128xf32>, vector<128x2xf32>, vector<8x2xf32> -> vector<8x2xf32>
    %c0_9 = arith.constant 0 : index
    %c0_10 = arith.constant 0 : index
    %10 = vector.load %arg5[%c0_9, %c0_10] : memref<1x2xf32, #tpu.memory_space<vmem>>, vector<1x2xf32>
    %11 = vector.broadcast %10 : vector<1x2xf32> to vector<8x2xf32>
    %12 = arith.addf %9, %11 : vector<8x2xf32>
    %c0_11 = arith.constant 0 : index
    %c0_12 = arith.constant 0 : index
    %13 = vector.load %arg6[%c0_11, %c0_12] : memref<8x2xf32, #tpu.memory_space<vmem>>, vector<8x2xf32>
    tpu.vector_store %arg6[%c0_11, %c0_12], %12 {strides = array<i32>} : memref<8x2xf32, #tpu.memory_space<vmem>>, vector<8x2xf32>,
    return
  }
  func.func @transform_0(%arg0: i32) -> (i32, i32) {
    %c0_i32 = arith.constant 0 : i32
    %c0_i32_0 = arith.constant 0 : i32
    return %arg0, %c0_i32 : i32, i32
  }
  func.func @transform_1(%arg0: i32) -> (i32, i32) {
    %c0_i32 = arith.constant 0 : i32
    %c0_i32_0 = arith.constant 0 : i32
    %c0_i32_1 = arith.constant 0 : i32
    return %c0_i32, %c0_i32_0 : i32, i32
  }
  func.func @transform_2(%arg0: i32) -> (i32, i32) {
    %c0_i32 = arith.constant 0 : i32
    %c0_i32_0 = arith.constant 0 : i32
    %c0_i32_1 = arith.constant 0 : i32
    return %c0_i32, %c0_i32_0 : i32, i32
  }
  func.func @transform_3(%arg0: i32) -> (i32, i32) {
    %c0_i32 = arith.constant 0 : i32
    %c0_i32_0 = arith.constant 0 : i32
    %c0_i32_1 = arith.constant 0 : i32
    return %c0_i32, %c0_i32_0 : i32, i32
  }
  func.func @transform_4(%arg0: i32) -> (i32, i32) {
    %c0_i32 = arith.constant 0 : i32
    %c0_i32_0 = arith.constant 0 : i32
    %c0_i32_1 = arith.constant 0 : i32
    return %c0_i32, %c0_i32_0 : i32, i32
  }
  func.func @transform_5(%arg0: i32) -> (i32, i32) {
    %c0_i32 = arith.constant 0 : i32
    %c0_i32_0 = arith.constant 0 : i32
    return %arg0, %c0_i32 : i32, i32
  }
}

</mosaic_0001>

<bundles_post_ra>
// kernel: tpu_custom_call.1
= control target key start
LH: loop header
LB: loop body
LE: loop exit
PB: predicated region body
PF: predicated region fallthrough
CT: control target
= control target key end

     0   :  { %v308_v0 = vmov 0.0|0.0   ;;  %vm309_vm0 = vmmov 0   ;;  %v310_v3 = vmov 0.0   ;;  %vm35_vm1 = vcmask 1044480   ;;  %s410_s1 = inlined_call_operand.vmem [shape: f32[21,128], index: 1, kind: input, shape index: {}]   ;;  %s411_s3 = inlined_call_operand.vmem [shape: f32[128,2], index: 3, kind: input, shape index: {}]   ;;  %s412_s0 = inlined_call_operand.vmem [shape: f32[8,21], index: 0, kind: input, shape index: {}]   ;;  %s413_s2 = inlined_call_operand.vmem [shape: f32[1,128], index: 2, kind: input, shape index: {}]   ;;  %s414_s4 = inlined_call_operand.vmem [shape: f32[1,2], index: 4, kind: input, shape index: {}]   ;;  %s415_s5 = inlined_call_operand.vmem [shape: f32[8,2], index: 5, kind: output, shape index: {}]  }
   0x1   :  { %278 = vmatprep.subr.bf16.mxu0 %v308_v0  ;;  %v21_v1 = vld [vmem:[%s410_s1] sm:$0xff]  ;;  %v22_v2 = vld [vmem:[%s410_s1 + $0x8] sm:$0xff]  ;;  %240 = vmatprep.mubr.msk.f32.mxu0 %vm309_vm0, %v310_v3  ;;  %v112_v8 = vld [vmem:[%s411_s3 + $0x10] sm:$0xff]  ;;  %vm31_vm2 = vcmask 171008   ;;  %vm203_vm3 = vcmask 15360  }
   0x2   :  { %v279_v4 = vpack.c.bf16 %v22_v2, %v21_v1  ;;  %281 = vmatprep.subr.bf16.mxu1 %v308_v0  ;;  %v110_v5 = vld [vmem:[%s411_s3] sm:$0xff]  ;;  %v111_v6 = vld [vmem:[%s411_s3 + $0x8] sm:$0xff]  ;;  %275 = vmatprep.mubr.msk.f32.mxu1 %vm309_vm0, %v310_v3  ;;  %v113_v9 = vld [vmem:[%s411_s3 + $0x18] sm:$0xff] }
   0x3   :  { %v282_v7 = vpack.c.bf16 %v111_v6, %v110_v5  ;;  %v23_v10 = vld [vmem:[%s410_s1 + $0x10] sm:$0x1f]  ;;  %v285_v11 = vpack.c.bf16 %v113_v9, %v112_v8  ;;  %v20_v12 = vld [vmem:[%s412_s0] sm:$0xff]  ;;  %v115_v14 = vld [vmem:[%s411_s3 + $0x28] sm:$0xff] }
   0x4   :  { %280 = vmatpush3.bf16.msra.mxu0 %v279_v4  ;;  %v114_v13 = vld [vmem:[%s411_s3 + $0x20] sm:$0xff]  ;;  %v116_v16 = vld [vmem:[%s411_s3 + $0x30] sm:$0xff]  ;;  %v117_v17 = vld [vmem:[%s411_s3 + $0x38] sm:$0xff] }
   0x5   :  { %238 = vmatprep.subr.mxu0 %v310_v3  ;;  %283 = vmatpush3.bf16.msra.mxu1 %v282_v7  ;;  %v288_v15 = vpack.c.bf16 %v115_v14, %v114_v13  ;;  %v291_v18 = vpack.c.bf16 %v117_v17, %v116_v16  ;;  %v118_v19 = vld [vmem:[%s411_s3 + $0x40] sm:$0xff]  ;;  %v119_v20 = vld [vmem:[%s411_s3 + $0x48] sm:$0xff]  ;;  %v120_v22 = vld [vmem:[%s411_s3 + $0x50] sm:$0xff] }
   0x6   :  { %284 = vmatprep.subr.bf16.mxu1 %v308_v0  ;;  %v294_v21 = vpack.c.bf16 %v119_v20, %v118_v19  ;;  %v121_v23 = vld [vmem:[%s411_s3 + $0x58] sm:$0xff]  ;;  %v122_v25 = vld [vmem:[%s411_s3 + $0x60] sm:$0xff]  ;;  %v123_v26 = vld [vmem:[%s411_s3 + $0x68] sm:$0xff] }
   0x7   :  { %v297_v24 = vpack.c.bf16 %v121_v23, %v120_v22  ;;  %v300_v27 = vpack.c.bf16 %v123_v26, %v122_v25  ;;  %v124_v28 = vld [vmem:[%s411_s3 + $0x70] sm:$0xff]  ;;  %v125_v29 = vld [vmem:[%s411_s3 + $0x78] sm:$0xff]  ;;  %v209_v31 = vld [vmem:[%s413_s2] ss:$0 sm:$0xff] }
   0x8   :  { %239 = vmatpush3.msk.msra.mxu0 %vm35_vm1, %v23_v10  ;;  %v303_v30 = vpack.c.bf16 %v125_v29, %v124_v28  ;;  %v212_v36 = vld [vmem:[%s414_s4] ss:$0 sm:$0xff] }
   0x9   :  { %241 = vmatmul.mubr.msk.f32.vlgmr.msra.gmra.mrb[0].mxu0 %vm31_vm2, %v20_v12  ;;  %286 = vmatpush3.bf16.msra.mxu1 %v285_v11 }
   0xa   :  { %287 = vmatprep.subr.bf16.mxu1 %v308_v0 }
   0xd   :  { %289 = vmatpush3.bf16.msra.mxu1 %v288_v15 }
   0xe   :  { %290 = vmatprep.subr.bf16.mxu1 %v308_v0 }
  0x11   :  { %292 = vmatpush3.bf16.msra.mxu1 %v291_v18 }
  0x12   :  { %293 = vmatprep.subr.bf16.mxu1 %v308_v0 }
  0x15   :  { %295 = vmatpush3.bf16.msra.mxu1 %v294_v21 }
  0x16   :  { %296 = vmatprep.subr.bf16.mxu1 %v308_v0 }
  0x19   :  { %298 = vmatpush3.bf16.msra.mxu1 %v297_v24 }
  0x1a   :  { %299 = vmatprep.subr.bf16.mxu1 %v308_v0 }
  0x1d   :  { %301 = vmatpush3.bf16.msra.mxu1 %v300_v27 }
  0x1e   :  { %302 = vmatprep.subr.bf16.mxu1 %v308_v0 }
  0x21   :  { %304 = vmatpush3.bf16.msra.mxu1 %v303_v30 }
  0xdc   :  { %v105_v32 = vpop.f32.mrb[0].mxu0 }
  0xdd   :  { %v106_v33 = vadd.f32 %v209_v31, %v105_v32  ;;  %v242_v34 = vpop.f32.mrb[1].mxu0 }
  0xdf   :  { %v109_v35 = vmax.f32 %v106_v33, 0.0 }
  0xe1   :  { %276 = vmatmul.mubr.f32.vlgmr.msra.gmra.mrb[0].mxu1 %v109_v35 }
 0x1b4   :  { %v199_v37 = vpop.f32.mrb[0].mxu1 }
 0x1b5   :  { %v200_v38 = vadd.f32 %v212_v36, %v199_v37  ;;  %v277_v39 = vpop.f32.mrb[1].mxu1 }
 0x1b7   :  { %204 = vst.msk [vmem:[%s415_s5] sm:$0xff] %vm203_vm3, %v200_v38 }

</bundles_post_ra>
